<compile_context>
chip_gen: v7x
topology: tpu7x:2x2x1
jax: 0.10.0
libtpu: 0.0.40
codegen_flags: <defaults>
</compile_context>

<pallas_src>
import functools

import jax
import jax.numpy as jnp
from jax.experimental import pallas as pl
from jax.experimental.pallas import tpu as pltpu


# ----------------------------------------------------------------------------
# Kernel 1: node head   out = node @ [W_AA | W_AP_top | W_AP_bot] + [b_AA | 0 | b_AP]
# (relu on the AA columns is deferred to kernel 2; b_AP rides on the V' columns)
# ----------------------------------------------------------------------------
def _node_head_kernel(x_ref, w_ref, b_ref, o_ref):
    h = jnp.dot(x_ref[...], w_ref[...], preferred_element_type=jnp.float32)
    o_ref[...] = (h + b_ref[...]).astype(o_ref.dtype)


def _node_head(node2d, w_pack, b_pack, out_dtype, tm=512):
    M, Fa = node2d.shape
    Wout = w_pack.shape[1]
    Mp = ((M + 7) // 8) * 8
    tm = min(tm, Mp)
    Mp = ((Mp + tm - 1) // tm) * tm
    x = node2d if Mp == M else jnp.pad(node2d, ((0, Mp - M), (0, 0)))
    out = pl.pallas_call(
        _node_head_kernel,
        out_shape=jax.ShapeDtypeStruct((Mp, Wout), out_dtype),
        grid=(Mp // tm,),
        in_specs=[
            pl.BlockSpec((tm, Fa), lambda i: (i, 0)),
            pl.BlockSpec((Fa, Wout), lambda i: (0, 0)),
            pl.BlockSpec((1, Wout), lambda i: (0, 0)),
        ],
        out_specs=pl.BlockSpec((tm, Wout), lambda i: (i, 0)),
        compiler_params=pltpu.CompilerParams(dimension_semantics=("parallel",)),
    )(x, w_pack, b_pack)
    return out[:M]


# ----------------------------------------------------------------------------
# Kernel 2: fused pair + atom kernel.
#   grid = (B, n_i_chunks), semantics ("parallel", "arbitrary")
#   per step: `ci` i-rows (ci*N pair entries) of one batch element.
# ----------------------------------------------------------------------------
def _pair_atom_kernel(pair_ref, aa_ref, u_ref, v_ref, ui_ref, vi_ref,
                      w_pppa_ref, b_pppa_ref,
                      w_pm_s_ref, w_pm_pp_ref, b_pm_ref,
                      w_am_aa_ref, w_am_pa_ref, b_am_ref,
                      p_ref, a_ref, acc_ref, *, n_valid, mask_rows):
    c = pl.program_id(1)
    nchunks = pl.num_programs(1)
    _, ci, N, Fp = pair_ref.shape
    HPP = w_pm_pp_ref.shape[0]
    HPA = acc_ref.shape[1]

    # --- fused [PP | PA] head: pair (already bf16) read once, one 128-lane matmul ---
    x = pair_ref[...].reshape(ci * N, Fp)
    h = jnp.dot(x, w_pppa_ref[...], preferred_element_type=jnp.float32)
    h = jnp.maximum(h + b_pppa_ref[...], 0.0)            # (ci*N, HPP+HPA) f32
    hpp = h[:, :HPP]                                     # PP lanes -> P merge
    hpa = h[:, HPP:]                                     # PA lanes -> atom path

    # --- accumulate PA.sum(dim=i) into VMEM (never round-trips HBM) ---
    @pl.when(c == 0)
    def _():
        acc_ref[...] = jnp.zeros_like(acc_ref)
    hpa3 = hpa.reshape(ci, N, HPA)
    if mask_rows:                                        # padded i rows contribute nothing
        row = jax.lax.broadcasted_iota(jnp.int32, (ci, 1, 1), 0)
        hpa3 = jnp.where(c * ci + row < n_valid, hpa3, 0.0)
    acc_ref[...] += jnp.sum(hpa3, axis=0)

    # --- bilinear AP (b_AP folded into V'): S = relu(U_i + V'_j) + relu(U_j + V'_i) ---
    # runs in bf16 on v6e/v7x (u/v refs are bf16), f32 on v5e -- pure VPU, no matmul.
    u_all = u_ref[0]
    v_all = v_ref[0]
    u_i = ui_ref[0]
    v_i = vi_ref[0]
    s = (jnp.maximum(u_i[:, None, :] + v_all[None, :, :], 0.0) +
         jnp.maximum(u_all[None, :, :] + v_i[:, None, :], 0.0))      # (ci, N, HAP)

    # --- P = relu(S @ W_Pm[:HAP] + PP @ W_Pm[HAP:] + b) : split-K, no zero-padded rows ---
    HAP = u_all.shape[-1]
    p = jnp.dot(s.reshape(ci * N, HAP).astype(jnp.bfloat16), w_pm_s_ref[...],
                preferred_element_type=jnp.float32)
    p = p + jnp.dot(hpp.astype(jnp.bfloat16), w_pm_pp_ref[...],
                    preferred_element_type=jnp.float32)
    p = jnp.maximum(p + b_pm_ref[...], 0.0)              # (ci*N, Pout) f32
    p_ref[...] = p.reshape(1, ci, N, p.shape[-1]).astype(p_ref.dtype)   # bf16 store

    # --- atom path finalized at the last i-chunk: A = relu(AA@W1 + PA_sum@W2 + b) ---
    @pl.when(c == nchunks - 1)
    def _():
        aa = jnp.maximum(aa_ref[0], 0.0).astype(jnp.bfloat16)   # deferred AA relu
        a = jnp.dot(aa, w_am_aa_ref[...], preferred_element_type=jnp.float32)
        a = a + jnp.dot(acc_ref[...].astype(jnp.bfloat16), w_am_pa_ref[...],
                        preferred_element_type=jnp.float32)
        a_ref[...] = jnp.maximum(a + b_am_ref[...], 0.0)[None].astype(a_ref.dtype)


def _pick_chunk(N, target_rows):
    """i rows per grid step. 16-aligned (bf16 sublane tile) so the chunked U/V
    BlockSpecs and in-kernel reshapes stay layout-free; prefers divisors of N
    (no padding), else pads the i axis and masks the padded rows in-kernel."""
    if N * N <= target_rows:
        return N, N                              # whole i axis per step, no padding
    max_ci = max(1, target_rows // N)
    d = max_ci - max_ci % 16
    while d >= 16:
        if N % d == 0:
            return d, N                          # aligned divisor -> zero-copy
        d -= 16
    ci = max(16, (max_ci // 16) * 16)            # fall back: pad i axis + row mask
    return ci, ((N + ci - 1) // ci) * ci


def _bilinear_dtype():
    # v5e has no bf16 VPU: keep the bilinear broadcast-adds (and U/V/AA) in f32 there.
    try:
        if "v5" in jax.devices()[0].device_kind.lower():
            return jnp.float32
    except Exception:
        pass
    return jnp.bfloat16


# ----------------------------------------------------------------------------
# WeaveLayer forward (update_pair=True)
# ----------------------------------------------------------------------------
def weave_layer(node, pair, p, *, chunk_rows=4096, pair_out_dtype=jnp.bfloat16):
    """Returns (A, P).
    A : [B, N, n_atom_out]     float32
    P : [B, N, N, n_pair_out]  pair_out_dtype (bf16 by default: P is the dominant
        HBM tensor; pass jnp.float32 if downstream needs full precision)."""
    B, N, Fa = node.shape
    Fp = pair.shape[-1]
    f32, bf16 = jnp.float32, jnp.bfloat16
    HAA = p["W_AA"].shape[1]
    HPA = p["W_PA"].shape[1]
    HAP = p["W_AP"].shape[1]
    HPP = p["W_PP"].shape[1]
    Aout = p["W_Am"].shape[1]
    Pout = p["W_Pm"].shape[1]
    uv_dtype = _bilinear_dtype()

    # ---- packed / split weights (tiny, once per call) ----
    # node head: [W_AA | W_AP_top | W_AP_bot], bias [b_AA | 0 | b_AP] (b_AP folded into V')
    w_node = jnp.concatenate([p["W_AA"], p["W_AP"][:Fa], p["W_AP"][Fa:]], axis=1).astype(bf16)
    b_node = jnp.concatenate([p["b_AA"], jnp.zeros((HAP,), f32), p["b_AP"]]).reshape(1, -1)
    # pair head fused as [W_PP | W_PA] so both halves feed clean K=64 matmuls downstream
    w_pppa = jnp.concatenate([p["W_PP"], p["W_PA"]], axis=1).astype(bf16)
    b_pppa = jnp.concatenate([p["b_PP"], p["b_PA"]]).reshape(1, -1).astype(f32)
    w_pm_s = p["W_Pm"][:HAP].astype(bf16)
    w_pm_pp = p["W_Pm"][HAP:].astype(bf16)
    b_pm = p["b_Pm"].reshape(1, -1).astype(f32)
    w_am_aa = p["W_Am"][:HAA].astype(bf16)
    w_am_pa = p["W_Am"][HAA:].astype(bf16)
    b_am = p["b_Am"].reshape(1, -1).astype(f32)

    # ---- kernel 1: AA(pre-relu) | U | V' in one matmul (node read once) ----
    nh = _node_head(node.reshape(B * N, Fa).astype(bf16), w_node, b_node, uv_dtype)
    nh = nh.reshape(B, N, HAA + 2 * HAP)
    aa = nh[..., :HAA]
    u = nh[..., HAA:HAA + HAP]
    v = nh[..., HAA + HAP:]

    # ---- i-chunking ----
    ci, ni = _pick_chunk(N, chunk_rows)
    nchunks = ni // ci
    mask_rows = ni != N

    pair_in = pair.astype(bf16)                  # halve pair HBM read + VMEM tile
    if mask_rows:
        # awkward N: zero-pad the i axis (padded rows are masked in-kernel)
        pair_in = jnp.pad(pair_in, ((0, 0), (0, ni - N), (0, 0), (0, 0)))
        u_c = jnp.pad(u, ((0, 0), (0, ni - N), (0, 0)))
        v_c = jnp.pad(v, ((0, 0), (0, ni - N), (0, 0)))
    else:
        u_c, v_c = u, v

    kernel = functools.partial(_pair_atom_kernel, n_valid=N, mask_rows=mask_rows)
    # TODO(synk): on v7x with B < 2, split the i-chunk axis into an outer size-2
    # "parallel" axis with per-core partial PA sums so both TensorCores stay busy.
    P_full, A = pl.pallas_call(
        kernel,
        out_shape=(jax.ShapeDtypeStruct((B, ni, N, Pout), pair_out_dtype),
                   jax.ShapeDtypeStruct((B, N, Aout), f32)),
        grid=(B, nchunks),
        in_specs=[
            pl.BlockSpec((1, ci, N, Fp), lambda b, c: (b, c, 0, 0)),    # pair i-chunk (bf16)
            pl.BlockSpec((1, N, HAA), lambda b, c: (b, 0, 0)),          # AA (pre-relu)
            pl.BlockSpec((1, N, HAP), lambda b, c: (b, 0, 0)),          # U  (all j)
            pl.BlockSpec((1, N, HAP), lambda b, c: (b, 0, 0)),          # V' (all j)
            pl.BlockSpec((1, ci, HAP), lambda b, c: (b, c, 0)),         # U  i-chunk
            pl.BlockSpec((1, ci, HAP), lambda b, c: (b, c, 0)),         # V' i-chunk
            pl.BlockSpec((Fp, HPP + HPA), lambda b, c: (0, 0)),         # [W_PP | W_PA]
            pl.BlockSpec((1, HPP + HPA), lambda b, c: (0, 0)),          # [b_PP | b_PA]
            pl.BlockSpec((HAP, Pout), lambda b, c: (0, 0)),             # W_Pm[:HAP]
            pl.BlockSpec((HPP, Pout), lambda b, c: (0, 0)),             # W_Pm[HAP:]
            pl.BlockSpec((1, Pout), lambda b, c: (0, 0)),               # b_Pm
            pl.BlockSpec((HAA, Aout), lambda b, c: (0, 0)),             # W_Am[:HAA]
            pl.BlockSpec((HPA, Aout), lambda b, c: (0, 0)),             # W_Am[HAA:]
            pl.BlockSpec((1, Aout), lambda b, c: (0, 0)),               # b_Am
        ],
        out_specs=(pl.BlockSpec((1, ci, N, Pout), lambda b, c: (b, c, 0, 0)),
                   pl.BlockSpec((1, N, Aout), lambda b, c: (b, 0, 0))),
        scratch_shapes=[pltpu.VMEM((N, HPA), f32)],                      # PA i-sum accumulator
        compiler_params=pltpu.CompilerParams(
            dimension_semantics=("parallel", "arbitrary"),
            vmem_limit_bytes=32 * 1024 * 1024),
    )(pair_in, aa, u, v, u_c, v_c, w_pppa, b_pppa,
      w_pm_s, w_pm_pp, b_pm, w_am_aa, w_am_pa, b_am)

    P = P_full[:, :N] if mask_rows else P_full
    return A, P


# ----------------------------------------------------------------------------
# Deterministic synthetic parameter init (shapes from WeaveLayer.__init__)
# ----------------------------------------------------------------------------
def init_weave_params(key, n_atom_in, n_pair_in=15, n_atom_out=64, n_pair_out=64,
                      n_hidden_AA=64, n_hidden_PA=64, n_hidden_AP=64, n_hidden_PP=64):
    def lin(k, fin, fout):
        kw, kb = jax.random.split(k)
        s = 1.0 / jnp.sqrt(jnp.float32(fin))
        W = jax.random.uniform(kw, (fin, fout), jnp.float32, -s, s)
        b = jax.random.uniform(kb, (fout,), jnp.float32, -s, s)
        return W, b

    keys = jax.random.split(key, 6)
    p = {}
    p["W_AA"], p["b_AA"] = lin(keys[0], n_atom_in, n_hidden_AA)
    p["W_PA"], p["b_PA"] = lin(keys[1], n_pair_in, n_hidden_PA)
    p["W_Am"], p["b_Am"] = lin(keys[2], n_hidden_AA + n_hidden_PA, n_atom_out)
    p["W_AP"], p["b_AP"] = lin(keys[3], 2 * n_atom_in, n_hidden_AP)
    p["W_PP"], p["b_PP"] = lin(keys[4], n_pair_in, n_hidden_PP)
    p["W_Pm"], p["b_Pm"] = lin(keys[5], n_hidden_AP + n_hidden_PP, n_pair_out)
    return p


# Pure-JAX f32 reference (mirrors the PyTorch forward) for correctness check.
def weave_ref(node, pair, p):
    relu = lambda x: jnp.maximum(x, 0.0)
    B, N, Fa = node.shape
    AA = relu(node @ p["W_AA"] + p["b_AA"])
    PA = relu(pair @ p["W_PA"] + p["b_PA"])
    A = relu(jnp.concatenate([AA, PA.sum(axis=1)], axis=-1) @ p["W_Am"] + p["b_Am"])
    xi = jnp.broadcast_to(node[:, :, None, :], (B, N, N, Fa))
    xj = jnp.broadcast_to(node[:, None, :, :], (B, N, N, Fa))
    AP_ij = relu(jnp.concatenate([xi, xj], -1) @ p["W_AP"] + p["b_AP"])
    AP_ji = relu(jnp.concatenate([xj, xi], -1) @ p["W_AP"] + p["b_AP"])
    PP = relu(pair @ p["W_PP"] + p["b_PP"])
    P = relu(jnp.concatenate([AP_ij + AP_ji, PP], -1) @ p["W_Pm"] + p["b_Pm"])
    return A, P


if __name__ == "__main__":
    key = jax.random.PRNGKey(0)
    k_node, k_pair, k_params = jax.random.split(key, 3)

    B, N = 2, 8
    n_atom_in, n_pair_in = 16, 15

    node_feats = jax.random.normal(k_node, (B, N, n_atom_in), jnp.float32)
    pair_feats = jax.random.normal(k_pair, (B, N, N, n_pair_in), jnp.float32)
    params = init_weave_params(k_params, n_atom_in, n_pair_in)

    fwd = jax.jit(weave_layer)
    A, P = fwd(node_feats, pair_feats, params)
    A = jax.block_until_ready(A)
    P = jax.block_until_ready(P)

    A_ref, P_ref = weave_ref(node_feats, pair_feats, params)
    assert A.shape == (B, N, 64) and P.shape == (B, N, N, 64)
    # bf16 operands / bf16 P output with f32 accumulation -> relaxed tolerance vs f32 ref
    assert jnp.allclose(A.astype(jnp.float32), A_ref, rtol=1e-1, atol=1e-1), \
        float(jnp.max(jnp.abs(A.astype(jnp.float32) - A_ref)))
    assert jnp.allclose(P.astype(jnp.float32), P_ref, rtol=1e-1, atol=1e-1), \
        float(jnp.max(jnp.abs(P.astype(jnp.float32) - P_ref)))

    # Second config: awkward N exercises the padded-i / masked / multi-chunk path.
    B2, N2 = 1, 17
    node2 = jax.random.normal(jax.random.PRNGKey(1), (B2, N2, n_atom_in), jnp.float32)
    pair2 = jax.random.normal(jax.random.PRNGKey(2), (B2, N2, N2, n_pair_in), jnp.float32)
    fwd2 = jax.jit(functools.partial(weave_layer, chunk_rows=128))
    A2, P2 = fwd2(node2, pair2, params)
    jax.block_until_ready((A2, P2))
    A2_ref, P2_ref = weave_ref(node2, pair2, params)
    assert A2.shape == (B2, N2, 64) and P2.shape == (B2, N2, N2, 64)
    assert jnp.allclose(A2.astype(jnp.float32), A2_ref, rtol=1e-1, atol=1e-1), \
        float(jnp.max(jnp.abs(A2.astype(jnp.float32) - A2_ref)))
    assert jnp.allclose(P2.astype(jnp.float32), P2_ref, rtol=1e-1, atol=1e-1), \
        float(jnp.max(jnp.abs(P2.astype(jnp.float32) - P2_ref)))

    print("KERNEL_OK")
</pallas_src>

<mosaic_0001>
module attributes {stable_mosaic.version = 11 : i64} {
  func.func @_node_head_kernel(%arg0: i32, %arg1: memref<16x16xbf16, #tpu.memory_space<vmem>>, %arg2: memref<16x192xbf16, #tpu.memory_space<vmem>>, %arg3: memref<1x192xf32, #tpu.memory_space<vmem>>, %arg4: memref<16x192xbf16, #tpu.memory_space<vmem>>) attributes {dimension_semantics = [#tpu.dimension_semantics<parallel>], iteration_bounds = array<i64: 1>, scalar_prefetch = 0 : i64, scratch_operands = 0 : i64, tpu.core_type = #tpu.core_type<tc>, window_params = [{transform_indices = @transform_0, window_bounds = array<i64: 16, 16>}, {pipeline_mode = #tpu.pipeline_mode<synchronous>, transform_indices = @transform_1, window_bounds = array<i64: 16, 192>}, {pipeline_mode = #tpu.pipeline_mode<synchronous>, transform_indices = @transform_2, window_bounds = array<i64: 1, 192>}, {transform_indices = @transform_3, window_bounds = array<i64: 16, 192>}]} {
    %c0 = arith.constant 0 : index
    %c0_0 = arith.constant 0 : index
    %0 = vector.load %arg1[%c0, %c0_0] : memref<16x16xbf16, #tpu.memory_space<vmem>>, vector<16x16xbf16>
    %c0_1 = arith.constant 0 : index
    %c0_2 = arith.constant 0 : index
    %1 = vector.load %arg2[%c0_1, %c0_2] : memref<16x192xbf16, #tpu.memory_space<vmem>>, vector<16x192xbf16>
    %cst = arith.constant dense<0.000000e+00> : vector<16x192xf32>
    %2 = tpu.matmul %0, %1, %cst {dimension_numbers = #tpu.dot_dimension_numbers<[1], [0], [0], [1], [0, 0, 1, 1], [], []>} : vector<16x16xbf16>, vector<16x192xbf16>, vector<16x192xf32> -> vector<16x192xf32>
    %c0_3 = arith.constant 0 : index
    %c0_4 = arith.constant 0 : index
    %3 = vector.load %arg3[%c0_3, %c0_4] : memref<1x192xf32, #tpu.memory_space<vmem>>, vector<1x192xf32>
    %4 = vector.broadcast %3 : vector<1x192xf32> to vector<16x192xf32>
    %5 = arith.addf %2, %4 : vector<16x192xf32>
    %6 = arith.truncf %5 : vector<16x192xf32> to vector<16x192xbf16>
    %c0_5 = arith.constant 0 : index
    %c0_6 = arith.constant 0 : index
    %7 = vector.load %arg4[%c0_5, %c0_6] : memref<16x192xbf16, #tpu.memory_space<vmem>>, vector<16x192xbf16>
    tpu.vector_store %arg4[%c0_5, %c0_6], %6 {strides = array<i32>} : memref<16x192xbf16, #tpu.memory_space<vmem>>, vector<16x192xbf16>,
    return
  }
  func.func @transform_0(%arg0: i32) -> (i32, i32) {
    %c0_i32 = arith.constant 0 : i32
    %c0_i32_0 = arith.constant 0 : i32
    return %arg0, %c0_i32 : i32, i32
  }
  func.func @transform_1(%arg0: i32) -> (i32, i32) {
    %c0_i32 = arith.constant 0 : i32
    %c0_i32_0 = arith.constant 0 : i32
    %c0_i32_1 = arith.constant 0 : i32
    return %c0_i32, %c0_i32_0 : i32, i32
  }
  func.func @transform_2(%arg0: i32) -> (i32, i32) {
    %c0_i32 = arith.constant 0 : i32
    %c0_i32_0 = arith.constant 0 : i32
    %c0_i32_1 = arith.constant 0 : i32
    return %c0_i32, %c0_i32_0 : i32, i32
  }
  func.func @transform_3(%arg0: i32) -> (i32, i32) {
    %c0_i32 = arith.constant 0 : i32
    %c0_i32_0 = arith.constant 0 : i32
    return %arg0, %c0_i32 : i32, i32
  }
}

module attributes {stable_mosaic.version = 11 : i64} {
  func.func @_pair_atom_kernel(%arg0: i32, %arg1: i32, %arg2: memref<1x8x8x15xbf16, #tpu.memory_space<vmem>>, %arg3: memref<1x8x64xbf16, #tpu.memory_space<vmem>>, %arg4: memref<1x8x64xbf16, #tpu.memory_space<vmem>>, %arg5: memref<1x8x64xbf16, #tpu.memory_space<vmem>>, %arg6: memref<1x8x64xbf16, #tpu.memory_space<vmem>>, %arg7: memref<1x8x64xbf16, #tpu.memory_space<vmem>>, %arg8: memref<15x128xbf16, #tpu.memory_space<vmem>>, %arg9: memref<1x128xf32, #tpu.memory_space<vmem>>, %arg10: memref<64x64xbf16, #tpu.memory_space<vmem>>, %arg11: memref<64x64xbf16, #tpu.memory_space<vmem>>, %arg12: memref<1x64xf32, #tpu.memory_space<vmem>>, %arg13: memref<64x64xbf16, #tpu.memory_space<vmem>>, %arg14: memref<64x64xbf16, #tpu.memory_space<vmem>>, %arg15: memref<1x64xf32, #tpu.memory_space<vmem>>, %arg16: memref<1x8x8x64xbf16, #tpu.memory_space<vmem>>, %arg17: memref<1x8x64xf32, #tpu.memory_space<vmem>>, %arg18: memref<8x64xf32, #tpu.memory_space<vmem>>) attributes {dimension_semantics = [#tpu.dimension_semantics<parallel>, #tpu.dimension_semantics<arbitrary>], iteration_bounds = array<i64: 2, 1>, scalar_prefetch = 0 : i64, scratch_operands = 1 : i64, tpu.core_type = #tpu.core_type<tc>, window_params = [{transform_indices = @transform_0, window_bounds = array<i64: 1, 8, 8, 15>}, {transform_indices = @transform_1, window_bounds = array<i64: 1, 8, 64>}, {transform_indices = @transform_2, window_bounds = array<i64: 1, 8, 64>}, {transform_indices = @transform_3, window_bounds = array<i64: 1, 8, 64>}, {transform_indices = @transform_4, window_bounds = array<i64: 1, 8, 64>}, {transform_indices = @transform_5, window_bounds = array<i64: 1, 8, 64>}, {pipeline_mode = #tpu.pipeline_mode<synchronous>, transform_indices = @transform_6, window_bounds = array<i64: 15, 128>}, {pipeline_mode = #tpu.pipeline_mode<synchronous>, transform_indices = @transform_7, window_bounds = array<i64: 1, 128>}, {pipeline_mode = #tpu.pipeline_mode<synchronous>, transform_indices = @transform_8, window_bounds = array<i64: 64, 64>}, {pipeline_mode = #tpu.pipeline_mode<synchronous>, transform_indices = @transform_9, window_bounds = array<i64: 64, 64>}, {pipeline_mode = #tpu.pipeline_mode<synchronous>, transform_indices = @transform_10, window_bounds = array<i64: 1, 64>}, {pipeline_mode = #tpu.pipeline_mode<synchronous>, transform_indices = @transform_11, window_bounds = array<i64: 64, 64>}, {pipeline_mode = #tpu.pipeline_mode<synchronous>, transform_indices = @transform_12, window_bounds = array<i64: 64, 64>}, {pipeline_mode = #tpu.pipeline_mode<synchronous>, transform_indices = @transform_13, window_bounds = array<i64: 1, 64>}, {transform_indices = @transform_14, window_bounds = array<i64: 1, 8, 8, 64>}, {transform_indices = @transform_15, window_bounds = array<i64: 1, 8, 64>}]} {
    %c0 = arith.constant 0 : index
    %c0_0 = arith.constant 0 : index
    %c0_1 = arith.constant 0 : index
    %c0_2 = arith.constant 0 : index
    %0 = vector.load %arg2[%c0, %c0_0, %c0_1, %c0_2] : memref<1x8x8x15xbf16, #tpu.memory_space<vmem>>, vector<1x8x8x15xbf16>
    %1 = vector.shape_cast %0 : vector<1x8x8x15xbf16> to vector<64x15xbf16>
    %c0_3 = arith.constant 0 : index
    %c0_4 = arith.constant 0 : index
    %2 = vector.load %arg8[%c0_3, %c0_4] : memref<15x128xbf16, #tpu.memory_space<vmem>>, vector<15x128xbf16>
    %cst = arith.constant dense<0.000000e+00> : vector<64x128xf32>
    %3 = tpu.matmul %1, %2, %cst {dimension_numbers = #tpu.dot_dimension_numbers<[1], [0], [0], [1], [0, 0, 1, 1], [], []>} : vector<64x15xbf16>, vector<15x128xbf16>, vector<64x128xf32> -> vector<64x128xf32>
    %c0_5 = arith.constant 0 : index
    %c0_6 = arith.constant 0 : index
    %4 = vector.load %arg9[%c0_5, %c0_6] : memref<1x128xf32, #tpu.memory_space<vmem>>, vector<1x128xf32>
    %5 = vector.broadcast %4 : vector<1x128xf32> to vector<64x128xf32>
    %6 = arith.addf %3, %5 : vector<64x128xf32>
    %cst_7 = arith.constant 0.000000e+00 : f32
    %7 = vector.broadcast %cst_7 : f32 to vector<64x128xf32>
    %8 = arith.maximumf %6, %7 : vector<64x128xf32>
    %9 = vector.extract_strided_slice %8 {offsets = [0, 0], sizes = [64, 64], strides = [1, 1]} : vector<64x128xf32> to vector<64x64xf32>
    %10 = vector.extract_strided_slice %8 {offsets = [0, 64], sizes = [64, 64], strides = [1, 1]} : vector<64x128xf32> to vector<64x64xf32>
    %c0_i32 = arith.constant 0 : i32
    %11 = arith.cmpi eq, %arg1, %c0_i32 : i32
    %12 = arith.extui %11 : i1 to i32
    %c0_i32_8 = arith.constant 0 : i32
    %13 = arith.cmpi ne, %12, %c0_i32_8 : i32
    scf.if %13 {
      %cst_43 = arith.constant 0.000000e+00 : f32
      %60 = vector.broadcast %cst_43 : f32 to vector<8x64xf32>
      %c0_44 = arith.constant 0 : index
      %c0_45 = arith.constant 0 : index
      %61 = vector.load %arg18[%c0_44, %c0_45] : memref<8x64xf32, #tpu.memory_space<vmem>>, vector<8x64xf32>
      tpu.vector_store %arg18[%c0_44, %c0_45], %60 {strides = array<i32>} : memref<8x64xf32, #tpu.memory_space<vmem>>, vector<8x64xf32>,
    } else {
    }
    %14 = vector.shape_cast %10 : vector<64x64xf32> to vector<8x8x64xf32>
    %c0_9 = arith.constant 0 : index
    %c0_10 = arith.constant 0 : index
    %15 = vector.load %arg18[%c0_9, %c0_10] : memref<8x64xf32, #tpu.memory_space<vmem>>, vector<8x64xf32>
    %cst_11 = arith.constant dense<0.000000e+00> : vector<8x64xf32>
    %16 = vector.multi_reduction <add>, %14, %cst_11 [0] : vector<8x8x64xf32> to vector<8x64xf32>
    %17 = arith.addf %15, %16 : vector<8x64xf32>
    %c0_12 = arith.constant 0 : index
    %c0_13 = arith.constant 0 : index
    %18 = vector.load %arg18[%c0_12, %c0_13] : memref<8x64xf32, #tpu.memory_space<vmem>>, vector<8x64xf32>
    tpu.vector_store %arg18[%c0_12, %c0_13], %17 {strides = array<i32>} : memref<8x64xf32, #tpu.memory_space<vmem>>, vector<8x64xf32>,
    %c0_14 = arith.constant 0 : index
    %c0_15 = arith.constant 0 : index
    %c0_16 = arith.constant 0 : index
    %19 = vector.load %arg4[%c0_14, %c0_15, %c0_16] : memref<1x8x64xbf16, #tpu.memory_space<vmem>>, vector<1x8x64xbf16>
    %20 = vector.shape_cast %19 : vector<1x8x64xbf16> to vector<8x64xbf16>
    %c0_17 = arith.constant 0 : index
    %c0_18 = arith.constant 0 : index
    %c0_19 = arith.constant 0 : index
    %21 = vector.load %arg5[%c0_17, %c0_18, %c0_19] : memref<1x8x64xbf16, #tpu.memory_space<vmem>>, vector<1x8x64xbf16>
    %22 = vector.shape_cast %21 : vector<1x8x64xbf16> to vector<8x64xbf16>
    %c0_20 = arith.constant 0 : index
    %c0_21 = arith.constant 0 : index
    %c0_22 = arith.constant 0 : index
    %23 = vector.load %arg6[%c0_20, %c0_21, %c0_22] : memref<1x8x64xbf16, #tpu.memory_space<vmem>>, vector<1x8x64xbf16>
    %24 = vector.shape_cast %23 : vector<1x8x64xbf16> to vector<8x64xbf16>
    %c0_23 = arith.constant 0 : index
    %c0_24 = arith.constant 0 : index
    %c0_25 = arith.constant 0 : index
    %25 = vector.load %arg7[%c0_23, %c0_24, %c0_25] : memref<1x8x64xbf16, #tpu.memory_space<vmem>>, vector<1x8x64xbf16>
    %26 = vector.shape_cast %25 : vector<1x8x64xbf16> to vector<8x64xbf16>
    %27 = vector.shape_cast %24 : vector<8x64xbf16> to vector<8x1x64xbf16>
    %28 = vector.shape_cast %22 : vector<8x64xbf16> to vector<1x8x64xbf16>
    %29 = vector.broadcast %27 : vector<8x1x64xbf16> to vector<8x8x64xbf16>
    %30 = vector.broadcast %28 : vector<1x8x64xbf16> to vector<8x8x64xbf16>
    %31 = arith.addf %29, %30 : vector<8x8x64xbf16>
    %cst_26 = arith.constant 0.000000e+00 : bf16
    %32 = vector.broadcast %cst_26 : bf16 to vector<8x8x64xbf16>
    %33 = arith.maximumf %31, %32 : vector<8x8x64xbf16>
    %34 = vector.shape_cast %20 : vector<8x64xbf16> to vector<1x8x64xbf16>
    %35 = vector.shape_cast %26 : vector<8x64xbf16> to vector<8x1x64xbf16>
    %36 = vector.broadcast %34 : vector<1x8x64xbf16> to vector<8x8x64xbf16>
    %37 = vector.broadcast %35 : vector<8x1x64xbf16> to vector<8x8x64xbf16>
    %38 = arith.addf %36, %37 : vector<8x8x64xbf16>
    %cst_27 = arith.constant 0.000000e+00 : bf16
    %39 = vector.broadcast %cst_27 : bf16 to vector<8x8x64xbf16>
    %40 = arith.maximumf %38, %39 : vector<8x8x64xbf16>
    %41 = arith.addf %33, %40 : vector<8x8x64xbf16>
    %42 = vector.shape_cast %41 : vector<8x8x64xbf16> to vector<64x64xbf16>
    %c0_28 = arith.constant 0 : index
    %c0_29 = arith.constant 0 : index
    %43 = vector.load %arg10[%c0_28, %c0_29] : memref<64x64xbf16, #tpu.memory_space<vmem>>, vector<64x64xbf16>
    %cst_30 = arith.constant dense<0.000000e+00> : vector<64x64xf32>
    %44 = tpu.matmul %42, %43, %cst_30 {dimension_numbers = #tpu.dot_dimension_numbers<[1], [0], [0], [1], [0, 0, 1, 1], [], []>} : vector<64x64xbf16>, vector<64x64xbf16>, vector<64x64xf32> -> vector<64x64xf32>
    %45 = arith.truncf %9 : vector<64x64xf32> to vector<64x64xbf16>
    %c0_31 = arith.constant 0 : index
    %c0_32 = arith.constant 0 : index
    %46 = vector.load %arg11[%c0_31, %c0_32] : memref<64x64xbf16, #tpu.memory_space<vmem>>, vector<64x64xbf16>
    %cst_33 = arith.constant dense<0.000000e+00> : vector<64x64xf32>
    %47 = tpu.matmul %45, %46, %cst_33 {dimension_numbers = #tpu.dot_dimension_numbers<[1], [0], [0], [1], [0, 0, 1, 1], [], []>} : vector<64x64xbf16>, vector<64x64xbf16>, vector<64x64xf32> -> vector<64x64xf32>
    %48 = arith.addf %44, %47 : vector<64x64xf32>
    %c0_34 = arith.constant 0 : index
    %c0_35 = arith.constant 0 : index
    %49 = vector.load %arg12[%c0_34, %c0_35] : memref<1x64xf32, #tpu.memory_space<vmem>>, vector<1x64xf32>
    %50 = vector.broadcast %49 : vector<1x64xf32> to vector<64x64xf32>
    %51 = arith.addf %48, %50 : vector<64x64xf32>
    %cst_36 = arith.constant 0.000000e+00 : f32
    %52 = vector.broadcast %cst_36 : f32 to vector<64x64xf32>
    %53 = arith.maximumf %51, %52 : vector<64x64xf32>
    %54 = vector.shape_cast %53 : vector<64x64xf32> to vector<1x8x8x64xf32>
    %55 = arith.truncf %54 : vector<1x8x8x64xf32> to vector<1x8x8x64xbf16>
    %c0_37 = arith.constant 0 : index
    %c0_38 = arith.constant 0 : index
    %c0_39 = arith.constant 0 : index
    %c0_40 = arith.constant 0 : index
    %56 = vector.load %arg16[%c0_37, %c0_38, %c0_39, %c0_40] : memref<1x8x8x64xbf16, #tpu.memory_space<vmem>>, vector<1x8x8x64xbf16>
    tpu.vector_store %arg16[%c0_37, %c0_38, %c0_39, %c0_40], %55 {strides = array<i32>} : memref<1x8x8x64xbf16, #tpu.memory_space<vmem>>, vector<1x8x8x64xbf16>,
    %c0_i32_41 = arith.constant 0 : i32
    %57 = arith.cmpi eq, %arg1, %c0_i32_41 : i32
    %58 = arith.extui %57 : i1 to i32
    %c0_i32_42 = arith.constant 0 : i32
    %59 = arith.cmpi ne, %58, %c0_i32_42 : i32
    scf.if %59 {
      %c0_43 = arith.constant 0 : index
      %c0_44 = arith.constant 0 : index
      %c0_45 = arith.constant 0 : index
      %60 = vector.load %arg3[%c0_43, %c0_44, %c0_45] : memref<1x8x64xbf16, #tpu.memory_space<vmem>>, vector<1x8x64xbf16>
      %61 = vector.shape_cast %60 : vector<1x8x64xbf16> to vector<8x64xbf16>
      %cst_46 = arith.constant 0.000000e+00 : bf16
      %62 = vector.broadcast %cst_46 : bf16 to vector<8x64xbf16>
      %63 = arith.maximumf %61, %62 : vector<8x64xbf16>
      %c0_47 = arith.constant 0 : index
      %c0_48 = arith.constant 0 : index
      %64 = vector.load %arg13[%c0_47, %c0_48] : memref<64x64xbf16, #tpu.memory_space<vmem>>, vector<64x64xbf16>
      %cst_49 = arith.constant dense<0.000000e+00> : vector<8x64xf32>
      %65 = tpu.matmul %63, %64, %cst_49 {dimension_numbers = #tpu.dot_dimension_numbers<[1], [0], [0], [1], [0, 0, 1, 1], [], []>} : vector<8x64xbf16>, vector<64x64xbf16>, vector<8x64xf32> -> vector<8x64xf32>
      %c0_50 = arith.constant 0 : index
      %c0_51 = arith.constant 0 : index
      %66 = vector.load %arg18[%c0_50, %c0_51] : memref<8x64xf32, #tpu.memory_space<vmem>>, vector<8x64xf32>
      %67 = arith.truncf %66 : vector<8x64xf32> to vector<8x64xbf16>
      %c0_52 = arith.constant 0 : index
      %c0_53 = arith.constant 0 : index
      %68 = vector.load %arg14[%c0_52, %c0_53] : memref<64x64xbf16, #tpu.memory_space<vmem>>, vector<64x64xbf16>
      %cst_54 = arith.constant dense<0.000000e+00> : vector<8x64xf32>
      %69 = tpu.matmul %67, %68, %cst_54 {dimension_numbers = #tpu.dot_dimension_numbers<[1], [0], [0], [1], [0, 0, 1, 1], [], []>} : vector<8x64xbf16>, vector<64x64xbf16>, vector<8x64xf32> -> vector<8x64xf32>
      %70 = arith.addf %65, %69 : vector<8x64xf32>
      %c0_55 = arith.constant 0 : index
      %c0_56 = arith.constant 0 : index
      %71 = vector.load %arg15[%c0_55, %c0_56] : memref<1x64xf32, #tpu.memory_space<vmem>>, vector<1x64xf32>
      %72 = vector.broadcast %71 : vector<1x64xf32> to vector<8x64xf32>
      %73 = arith.addf %70, %72 : vector<8x64xf32>
      %cst_57 = arith.constant 0.000000e+00 : f32
      %74 = vector.broadcast %cst_57 : f32 to vector<8x64xf32>
      %75 = arith.maximumf %73, %74 : vector<8x64xf32>
      %76 = vector.shape_cast %75 : vector<8x64xf32> to vector<1x8x64xf32>
      %c0_58 = arith.constant 0 : index
      %c0_59 = arith.constant 0 : index
      %c0_60 = arith.constant 0 : index
      %77 = vector.load %arg17[%c0_58, %c0_59, %c0_60] : memref<1x8x64xf32, #tpu.memory_space<vmem>>, vector<1x8x64xf32>
      tpu.vector_store %arg17[%c0_58, %c0_59, %c0_60], %76 {strides = array<i32>} : memref<1x8x64xf32, #tpu.memory_space<vmem>>, vector<1x8x64xf32>,
    } else {
    }
    return
  }
  func.func @transform_0(%arg0: i32, %arg1: i32) -> (i32, i32, i32, i32) {
    %c0_i32 = arith.constant 0 : i32
    %c0_i32_0 = arith.constant 0 : i32
    %c0_i32_1 = arith.constant 0 : i32
    return %arg0, %arg1, %c0_i32, %c0_i32_0 : i32, i32, i32, i32
  }
  func.func @transform_1(%arg0: i32, %arg1: i32) -> (i32, i32, i32) {
    %c0_i32 = arith.constant 0 : i32
    %c0_i32_0 = arith.constant 0 : i32
    %c0_i32_1 = arith.constant 0 : i32
    return %arg0, %c0_i32, %c0_i32_0 : i32, i32, i32
  }
  func.func @transform_2(%arg0: i32, %arg1: i32) -> (i32, i32, i32) {
    %c0_i32 = arith.constant 0 : i32
    %c0_i32_0 = arith.constant 0 : i32
    %c0_i32_1 = arith.constant 0 : i32
    return %arg0, %c0_i32, %c0_i32_0 : i32, i32, i32
  }
  func.func @transform_3(%arg0: i32, %arg1: i32) -> (i32, i32, i32) {
    %c0_i32 = arith.constant 0 : i32
    %c0_i32_0 = arith.constant 0 : i32
    %c0_i32_1 = arith.constant 0 : i32
    return %arg0, %c0_i32, %c0_i32_0 : i32, i32, i32
  }
  func.func @transform_4(%arg0: i32, %arg1: i32) -> (i32, i32, i32) {
    %c0_i32 = arith.constant 0 : i32
    %c0_i32_0 = arith.constant 0 : i32
    return %arg0, %arg1, %c0_i32 : i32, i32, i32
  }
  func.func @transform_5(%arg0: i32, %arg1: i32) -> (i32, i32, i32) {
    %c0_i32 = arith.constant 0 : i32
    %c0_i32_0 = arith.constant 0 : i32
    return %arg0, %arg1, %c0_i32 : i32, i32, i32
  }
  func.func @transform_6(%arg0: i32, %arg1: i32) -> (i32, i32) {
    %c0_i32 = arith.constant 0 : i32
    %c0_i32_0 = arith.constant 0 : i32
    %c0_i32_1 = arith.constant 0 : i32
    return %c0_i32, %c0_i32_0 : i32, i32
  }
  func.func @transform_7(%arg0: i32, %arg1: i32) -> (i32, i32) {
    %c0_i32 = arith.constant 0 : i32
    %c0_i32_0 = arith.constant 0 : i32
    %c0_i32_1 = arith.constant 0 : i32
    return %c0_i32, %c0_i32_0 : i32, i32
  }
  func.func @transform_8(%arg0: i32, %arg1: i32) -> (i32, i32) {
    %c0_i32 = arith.constant 0 : i32
    %c0_i32_0 = arith.constant 0 : i32
    %c0_i32_1 = arith.constant 0 : i32
    return %c0_i32, %c0_i32_0 : i32, i32
  }
  func.func @transform_9(%arg0: i32, %arg1: i32) -> (i32, i32) {
    %c0_i32 = arith.constant 0 : i32
    %c0_i32_0 = arith.constant 0 : i32
    %c0_i32_1 = arith.constant 0 : i32
    return %c0_i32, %c0_i32_0 : i32, i32
  }
  func.func @transform_10(%arg0: i32, %arg1: i32) -> (i32, i32) {
    %c0_i32 = arith.constant 0 : i32
    %c0_i32_0 = arith.constant 0 : i32
    %c0_i32_1 = arith.constant 0 : i32
    return %c0_i32, %c0_i32_0 : i32, i32
  }
  func.func @transform_11(%arg0: i32, %arg1: i32) -> (i32, i32) {
    %c0_i32 = arith.constant 0 : i32
    %c0_i32_0 = arith.constant 0 : i32
    %c0_i32_1 = arith.constant 0 : i32
    return %c0_i32, %c0_i32_0 : i32, i32
  }
  func.func @transform_12(%arg0: i32, %arg1: i32) -> (i32, i32) {
    %c0_i32 = arith.constant 0 : i32
    %c0_i32_0 = arith.constant 0 : i32
    %c0_i32_1 = arith.constant 0 : i32
    return %c0_i32, %c0_i32_0 : i32, i32
  }
  func.func @transform_13(%arg0: i32, %arg1: i32) -> (i32, i32) {
    %c0_i32 = arith.constant 0 : i32
    %c0_i32_0 = arith.constant 0 : i32
    %c0_i32_1 = arith.constant 0 : i32
    return %c0_i32, %c0_i32_0 : i32, i32
  }
  func.func @transform_14(%arg0: i32, %arg1: i32) -> (i32, i32, i32, i32) {
    %c0_i32 = arith.constant 0 : i32
    %c0_i32_0 = arith.constant 0 : i32
    %c0_i32_1 = arith.constant 0 : i32
    return %arg0, %arg1, %c0_i32, %c0_i32_0 : i32, i32, i32, i32
  }
  func.func @transform_15(%arg0: i32, %arg1: i32) -> (i32, i32, i32) {
    %c0_i32 = arith.constant 0 : i32
    %c0_i32_0 = arith.constant 0 : i32
    %c0_i32_1 = arith.constant 0 : i32
    return %arg0, %c0_i32, %c0_i32_0 : i32, i32, i32
  }
}

</mosaic_0001>

<bundles_post_ra>
// kernel: weave_layer.2
= control target key start
LH: loop header
LB: loop body
LE: loop exit
PB: predicated region body
PF: predicated region fallthrough
CT: control target
= control target key end

     0   :  { %v127_v1 = vmov 0   ;;  %vm46_vm0 = vcmask 130048   ;;  %v21_v4 = vlaneseq  ;;  %vm105_vm1 = vcmask 1043456   ;;  %s166_s1 = inlined_call_operand.vmem [shape: bf16[16,192], index: 1, kind: input, shape index: {}]   ;;  %s167_s0 = inlined_call_operand.vmem [shape: bf16[16,16], index: 0, kind: input, shape index: {}]   ;;  %s168_s2 = inlined_call_operand.vmem [shape: f32[1,192], index: 2, kind: input, shape index: {}]   ;;  %s169_s3 = inlined_call_operand.vmem [shape: bf16[16,192], index: 3, kind: output, shape index: {}]  }
   0x1   :  { %v123_v0 = vld [vmem:[%s166_s1 + $0x4] ss:$8 sps:$4 sm:$0xff]   ;;  %82 = vmatprep.mubr.bf16.mxu0 %v127_v1  ;;  %v125_v2 = vld [vmem:[%s166_s1] ss:$8 sps:$4 sm:$0xff]   ;;  %vm106_vm2 = vcmask 523268  }
   0x2   :  { %50 = vmatprep.subr.bf16.mxu0 %v123_v0  ;;  %v126_v3 = vld [vmem:[%s167_s0] sm:$0xff]   ;;  %v22_v5 = vshrl.u32 %v21_v4, 7  ;;  %vm107_vm3 = vmor %vm106_vm2, %vm105_vm1 }
   0x3   :  { %51 = vmatpush1.bf16.msra.mxu0 %v125_v2  ;;  %v19_v7 = vld [vmem:[%s168_s2] sm:$0x3] }
   0x4   :  { %v23_v6 = vsub.s32 0, %v22_v5  ;;  %v27_v8 = vsub.s32 1, %v22_v5 }
   0x6   :  { %117 = vmatmul.mubr.msk.bf16.vlgmr.msra.gmra.mrb[0].mxu0 %vm46_vm0, %v126_v3  ;;  %v24_v9 = vrot.slane %v19_v7, %v23_v6  ;;  %v28_v10 = vrot.slane %v19_v7, %v27_v8 }
  0xd9   :  { %v84_v11 = vpop.f32.mrb[0].mxu0 }
  0xda   :  { %v85_v12 = vadd.f32 %v84_v11, %v24_v9  ;;  %v86_v13 = vpop.f32.mrb[1].mxu0 }
  0xdb   :  { %v87_v14 = vadd.f32 %v86_v13, %v28_v10  ;;  %v88_v15 = vpop.f32.mrb[2].mxu0 }
  0xdc   :  { %v89_v16 = vadd.f32 %v88_v15, %v24_v9  ;;  %v90_v17 = vpop.f32.mrb[3].mxu0 }
  0xdd   :  { %v120_v18 = vpack.c.bf16 %v87_v14, %v85_v12  ;;  %v91_v19 = vadd.f32 %v90_v17, %v28_v10 }
  0xdf   :  { %108 = vst.msk [vmem:[%s169_s3] sm:$0xff] %vm107_vm3, %v120_v18  ;;  %v121_v20 = vpack.c.bf16 %v91_v19, %v89_v16 }
  0xe1   :  { %109 = vst.msk [vmem:[%s169_s3 + $0x8] sm:$0xff] %vm107_vm3, %v121_v20 }

// kernel: weave_layer.3
= control target key start
LH: loop header
LB: loop body
LE: loop exit
PB: predicated region body
PF: predicated region fallthrough
CT: control target
= control target key end

     0   :  { %s2633_s0 = inlined_call_operand.vmem [shape: bf16[2,8,8,15], index: 0, kind: input, shape index: {}]   ;;  %s2634_s1 = inlined_call_operand.vmem [shape: bf16[2,8,64], index: 1, kind: input, shape index: {}]   ;;  %s2635_s2 = inlined_call_operand.vmem [shape: bf16[2,8,64], index: 2, kind: input, shape index: {}, may-alias: {2,4}]   ;;  %s2636_s3 = inlined_call_operand.vmem [shape: bf16[2,8,64], index: 3, kind: input, shape index: {}, may-alias: {3,5}]   ;;  %s2637_s4 = inlined_call_operand.vmem [shape: bf16[2,8,64], index: 4, kind: input, shape index: {}, may-alias: {2,4}]   ;;  %s2638_s5 = inlined_call_operand.vmem [shape: bf16[2,8,64], index: 5, kind: input, shape index: {}, may-alias: {3,5}]   ;;  %s2639_s6 = inlined_call_operand.vmem [shape: bf16[15,128], index: 6, kind: input, shape index: {}]   ;;  %s2640_s7 = inlined_call_operand.vmem [shape: f32[1,128], index: 7, kind: input, shape index: {}]   ;;  %s2641_s8 = inlined_call_operand.vmem [shape: bf16[64,64], index: 8, kind: input, shape index: {}]   ;;  %s2642_s9 = inlined_call_operand.vmem [shape: bf16[64,64], index: 9, kind: input, shape index: {}]   ;;  %s2643_s10 = inlined_call_operand.vmem [shape: f32[1,64], index: 10, kind: input, shape index: {}]   ;;  %s2644_s11 = inlined_call_operand.vmem [shape: bf16[64,64], index: 11, kind: input, shape index: {}]   ;;  %s2645_s12 = inlined_call_operand.vmem [shape: bf16[64,64], index: 12, kind: input, shape index: {}]   ;;  %s2646_s13 = inlined_call_operand.vmem [shape: f32[1,64], index: 13, kind: input, shape index: {}]   ;;  %s2647_s14 = inlined_call_operand.hbm [shape: bf16[2,8,8,64], index: 14, kind: output, shape index: {0}]   ;;  %s2648_s15 = inlined_call_operand.hbm [shape: f32[2,8,64], index: 15, kind: output, shape index: {1}]  }
   0x1   :  { %2652 = sst [smem:[#allocation12_spill]] %s2633_s0 }
   0x2   :  { %2653 = sst [smem:[#allocation13_spill]] %s2634_s1 }
   0x3   :  { %2654 = sst [smem:[#allocation14_spill]] %s2635_s2 }
   0x4   :  { %2655 = sst [smem:[#allocation15_spill]] %s2639_s6 }
   0x5   :  { %21 = vsyncpa [#allocation4], 0 }
   0x6   :  { %23 = vsyncpa [#allocation4 + $0x1], 0 }
   0x7   :  { %24 = vsyncpa [#allocation6], 0 }
   0x8   :  { %26 = vsyncpa [#allocation6 + $0x1], 0  ;;  %s2239_s18 = smov 0   ;;  %s2241_s19 = smov 0  }
   0x9   :  { %s2243_s20 = smov 0   ;;  %s2245_s21 = smov 0  }
   0xa   :  { %s2247_s22 = smov 0   ;;  %s2249_s23 = smov 0  }
   0xb LB: > { %2656 = sst [smem:[#allocation9_spill]] %s2144_s22  ;;  %s1770_s24 = sadd.s32 4294967295, %s2148_s23   ;;  %s2148_s23 = sphi %s2249_s23, %s32_s23   ;;  %s2144_s22 = sphi %s2247_s22, %s2668_s22   ;;  %s2140_s21 = sphi %s2245_s21, %s2667_s21   ;;  %s2136_s20 = sphi %s2243_s20, %s2671_s20   ;;  %s2132_s19 = sphi %s2241_s19, %s2670_s19   ;;  %s2128_s18 = sphi %s2239_s18, %s2669_s18  }
   0xc   : > { %s1771_s25 = sadd.s32 4294967294, %s2148_s23   ;;  %s44_s26 = sadd.s32 1, %s2144_s22 }
   0xd   : > { %s383_s27 = sadd.s32 1, %s2136_s20  ;;  %p46_p0 = scmp.ge.s32.totalorder %s44_s26, 2 }
   0xe   : > { %p393_p1 = scmp.ne.s32.totalorder %s2136_s20, %s2132_s19  ;;  %p394_p2 = scmp.eq.s32.totalorder %s1770_s24, 1 }
   0xf   : > { %p399_p3 = scmp.ne.s32.totalorder %s2132_s19, %s2128_s18  ;;  %s2673_s26 = smov (%p46_p0, %s44_s26), 0 }
  0x10   : > { %2657 = sst [smem:[#allocation10_spill]] %s2673_s26  ;;  %p2279_p4 = por %p394_p2, %p393_p1 }
  0x11   : > { %p400_p5 = scmp.eq.s32.totalorder %s1771_s25, 1  ;;  %s378_s29 = ssub.s32 %s2144_s22, %s2673_s26 }
  0x12   : > { %p1774_p6 = scmp.ge.s32.totalorder %s2148_s23, 1  ;;  %p381_p7 = scmp.eq.s32.totalorder %s378_s29, 0 }
  0x13   : > { %p2286_p8 = por %p400_p5, %p399_p3  ;;  %p522_p9 = scmp.lt.s32.totalorder %s2148_s23, 3 }
  0x14   : > { %s2292_s16 = scalar_select %p381_p7, %s2136_s20, %s383_s27  }
  0x15   : > { %p523_p10 = pnand %p1774_p6, %p522_p9 }
  0x16   : > { %2660 = sst [smem:[#allocation11_spill]] %s2292_s16  ;;  %s2661_s6 = sld [smem:[#allocation15_spill]] (!%p523_p10)  ;;  %vm698_vm0 = vcmask (!%p523_p10), 1046528   ;;  %vm699_vm1 = vcmask (!%p523_p10), 1047552   ;;  %v2150_v1 = vmov (!%p523_p10), 65535   ;;  %v2022_v3 = vld [vmem:[%s2642_s9] sm:$0xff] (!%p523_p10)   ;;  %v824_v18 = vlaneseq (!%p523_p10) }
  0x17   : > { %526 = sbr.rel (%p523_p10) target bundleno = 645 (0x285), region = 76  ;;  %p606_p11 = scmp.lt.s32.totalorder (!%p523_p10), %s2140_s21, 1  ;;  %v700_v2 = vsel (!%p523_p10), %vm698_vm0, 4294967295, %v2150_v1  ;;  %v2023_v5 = vld [vmem:[%s2642_s9 + $0x8] sm:$0xff] (!%p523_p10)   ;;  %1886 = vmatprep.subr.bf16.mxu1 (!%p523_p10), %v2022_v3  ;;  %vm685_vm2 = vcmask (!%p523_p10), 121856   ;;  %v2024_v11 = vld [vmem:[%s2642_s9 + $0x10] sm:$0xff] (!%p523_p10)  }
  0x18   : > { %v701_v4 = vsel (!%p523_p10), %vm699_vm1, %v700_v2, 0  ;;  %1887 = vmatpush3.bf16.msra.mxu1 (!%p523_p10), %v2022_v3  ;;  %s2662_s0 = sld [smem:[#allocation12_spill]] (!%p523_p10)  ;;  %v2025_v12 = vld [vmem:[%s2642_s9 + $0x18] sm:$0xff] (!%p523_p10)   ;;  %v2320_v13 = vld [vmem:[%s2641_s8] sm:$0xff] (!%p523_p10)   ;;  %vm782_vm3 = vcmask (!%p523_p10), 523264   ;;  %v2151_v15 = vmov (!%p523_p10), 0.0  }
  0x19   : > { %1888 = vmatprep.subr.bf16.mxu1 (!%p523_p10), %v2023_v5  ;;  %v2030_v14 = vld [vmem:[%s2645_s12] sm:$0xff] (!%p523_p10)   ;;  %783 = vst.msk [vmem:[#allocation2] sm:$0xff] (!%p523_p10), %vm782_vm3, %v2151_v15  ;;  %v2152_v16 = vmov (!%p523_p10), 1966171168   ;;  %v825_v20 = vshrl.u32 (!%p523_p10), %v824_v18, 7  ;;  %s2663_s2 = sld [smem:[#allocation14_spill]] (!%p523_p10) }
  0x1a   : > { %v822_v17 = vunpack.c.l.s4 (!%p523_p10), %v2152_v16  ;;  %vm785_vm4 = vcmask (!%p523_p10), 1048064   ;;  %vm2154_vm5 = vmmov (!%p523_p10), 0   ;;  %s2664_s1 = sld [smem:[#allocation13_spill]] (!%p523_p10)  ;;  %vm1383_vm6 = vcmask (!%p523_p10), 519168   ;;  %s1844_s25 = sshll.u32 (!%p523_p10), %s2140_s21, 9 }
  0x1b   : > { %v2341_v33 = vsub.s32 (!%p523_p10), 0, %v825_v20  ;;  %s2544_s24 = scalar_lea.hbm (!%p523_p10), %s2647_s14, %s1844_s25 }
  0x1c   : > { %v2017_v0 = vld [vmem:[%s2661_s6] sm:$0xff] (!%p523_p10)   ;;  %1889 = vmatpush3.bf16.msra.mxu1 (!%p523_p10), %v2023_v5  ;;  %v823_v19 = vunpack.c.0.s8 (!%p523_p10), %v822_v17 }
  0x1d   : > { %v703_v6 = vand.u32 (!%p523_p10), %v2017_v0, %v701_v4  ;;  %1890 = vmatprep.subr.bf16.mxu1 (!%p523_p10), %v2024_v11 }
  0x1e   : > { %s2302_s27 = scalar_select %p606_p11, %s2140_s21, 1  ;;  %v826_v22 = vsub.s32 %v823_v19, %v825_v20 }
  0x1f   : > { %1876 = vmatprep.subr.bf16.mxu0 %v703_v6 }
  0x20   : > { %s1843_s17 = sshll.u32 %s2302_s27, 5  ;;  %1877 = vmatpush3.bf16.msra.mxu0 %v703_v6  ;;  %1891 = vmatpush3.bf16.msra.mxu1 %v2024_v11  ;;  %s2331_s22 = sshll.u32 %s2302_s27, 2 }
  0x21   : > { %s613_s16 = scalar_lea.vmem %s2662_s0, %s1843_s17  ;;  %1892 = vmatprep.subr.bf16.mxu1 %v2025_v12  ;;  %1918 = vmatprep.subr.bf16.mxu0 %v2151_v15  ;;  %s633_s6 = scalar_lea.vmem %s2637_s4, %s2331_s22 }
  0x22   : > { %v2018_v7 = vld [vmem:[%s613_s16] sm:$0xff]   ;;  %v2019_v8 = vld [vmem:[%s613_s16 + $0x8] sm:$0xff]   ;;  %v2020_v9 = vld [vmem:[%s613_s16 + $0x10] sm:$0xff]   ;;  %s622_s26 = scalar_lea.vmem %s2663_s2, %s2331_s22  ;;  %s626_s29 = scalar_lea.vmem %s2636_s3, %s2331_s22 }
  0x23   : > { %1878 = vmatprep.mubr.msk.bf16.mxu0 %vm685_vm2, %v2018_v7  ;;  %v2021_v10 = vld [vmem:[%s613_s16 + $0x18] sm:$0xff]   ;;  %s640_s16 = scalar_lea.vmem %s2638_s5, %s2331_s22  ;;  %v1794_v21 = vld.sshfl [vmem:[%s633_s6] sm:$0x33 pattern:$0x75316420]  ;;  %s2651_s6 = smov 64  }
  0x24   : > { %1879 = vmatmul.mubr.msk.bf16.vlgmr.msra.gmra.mrb[0].mxu0 %vm685_vm2, %v2019_v8  ;;  %1893 = vmatpush3.bf16.msra.mxu1 %v2025_v12  ;;  %v1799_v23 = vld.sshfl [vmem:[%s640_s16] sm:$0x33 pattern:$0x75316420]  ;;  %v820_v24 = vcombine.high %v1794_v21, %v1794_v21  ;;  %v827_v25 = vrot.slane %v1794_v21, %v826_v22  ;;  %s618_s17 = scalar_lea.vmem %s2664_s1, %s2331_s22  ;;  %s2517_s27 = sand.u32 1, %s2132_s19  }
  0x25   : > { %1882 = vmatprep.mubr.msk.bf16.mxu0 %vm685_vm2, %v2020_v9  ;;  %1902 = vmatprep.subr.bf16.mxu1 %v2320_v13  ;;  %v972_v26 = vrot.slane %v1799_v23, %v826_v22  ;;  %v965_v28 = vcombine.high %v1799_v23, %v1799_v23  ;;  %v2361_v61 = vld [vmem:[%s622_s26] sm:$0xf]  ;;  %s1775_s22 = sshll.u32 %s2517_s27, 5  ;;  %s1560_s26 = scalar_lea.sflag [#allocation4], %s2517_s27 }
  0x26   : > { %1919 = vmatpush3.bf16.msra.mxu0 %v2030_v14  ;;  %v834_v27 = vrot.slane %v820_v24, %v826_v22  ;;  %v838_v29 = vunpack.i.h.s16 %v827_v25  ;;  %v1795_v32 = vpack.i.b16 %v827_v25, %v827_v25  ;;  %v835_v55 = vcombine.high %v827_v25, %v827_v25  ;;  %v2363_v62 = vld [vmem:[%s626_s29] sm:$0xf]  ;;  %s2156_s0 = smov [#allocation3]  }
  0x27   : > { %1920 = vmatprep.subr.bf16.mxu0 %v2151_v15  ;;  %v983_v30 = vunpack.i.h.s16 %v972_v26  ;;  %v979_v34 = vrot.slane %v965_v28, %v826_v22  ;;  %v1800_v35 = vpack.i.b16 %v972_v26, %v972_v26  ;;  %v980_v56 = vcombine.high %v972_v26, %v972_v26  ;;  %s2042_s1 = sshll.u32 %s2156_s0, 4  ;;  %s2043_s1 = int_to_ptr.vmem [resolvable:$false] %s2042_s1 }
  0x28   : > { %v840_v31 = vunpack.i.h.s16 %v834_v27  ;;  %v846_v36 = vpack.i.b16 %v838_v29, %v838_v29  ;;  %v1796_v38 = vpack.i.b16 %v834_v27, %v834_v27  ;;  %v856_v40 = vrot.slane %v1795_v32, %v2341_v33  ;;  %v2386_v32 = vld [vmem:[%s2640_s7] ss:$0 sm:$0xff]  ;;  %s2044_s2 = scalar_lea.vmem %s2043_s1, 1024 }
  0x29   : > { %v991_v37 = vpack.i.b16 %v983_v30, %v983_v30  ;;  %v1001_v41 = vrot.slane %v1800_v35, %v2341_v33  ;;  %v985_v42 = vunpack.i.h.s16 %v979_v34  ;;  %v1801_v46 = vpack.i.b16 %v979_v34, %v979_v34 }
  0x2a   : > { %v848_v39 = vpack.i.b16 %v840_v31, %v840_v31  ;;  %v860_v43 = vrot.slane %v846_v36, %v2341_v33  ;;  %v864_v45 = vrot.slane %v1796_v38, %v2341_v33  ;;  %v886_v48 = vpack.i.b16 %v856_v40, %v856_v40 }
  0x2b   : > { %v1005_v44 = vrot.slane %v991_v37, %v2341_v33  ;;  %v1031_v49 = vpack.i.b16 %v1001_v41, %v1001_v41  ;;  %v993_v50 = vpack.i.b16 %v985_v42, %v985_v42  ;;  %v1009_v54 = vrot.slane %v1801_v46, %v2341_v33 }
  0x2c   : > { %1883 = vmatmul.mubr.msk.bf16.gmra.mrb[4].mxu0 %vm685_vm2, %v2021_v10  ;;  %v868_v47 = vrot.slane %v848_v39, %v2341_v33  ;;  %v893_v51 = vpack.i.b16 %v860_v43, %v860_v43  ;;  %v900_v53 = vpack.i.b16 %v864_v45, %v864_v45  ;;  %v891_v58 = vrot.slane %v886_v48, %v2341_v33 }
  0x2d   : > { %v1038_v52 = vpack.i.b16 %v1005_v44, %v1005_v44  ;;  %v1036_v59 = vrot.slane %v1031_v49, %v2341_v33  ;;  %v1013_v60 = vrot.slane %v993_v50, %v2341_v33  ;;  %v1045_v2 = vpack.i.b16 %v1009_v54, %v1009_v54  ;;  %1926 = vmatprep.mubr.msk.bf16.mxu0 %vm2154_vm5, %v2151_v15 }
  0x2e   : > { %v907_v57 = vpack.i.b16 %v868_v47, %v868_v47  ;;  %v898_v63 = vrot.slane %v893_v51, %v2341_v33  ;;  %v905_v1 = vrot.slane %v900_v53, %v2341_v33  ;;  %v842_v3 = vunpack.i.h.s16 %v835_v55 }
  0x2f   : > { %v1043_v0 = vrot.slane %v1038_v52, %v2341_v33  ;;  %v987_v4 = vunpack.i.h.s16 %v980_v56  ;;  %v1797_v6 = vpack.i.b16 %v835_v55, %v835_v55  ;;  %v836_v7 = vcombine.high %v834_v27, %v834_v27 }
  0x30   : > { %v912_v5 = vrot.slane %v907_v57, %v2341_v33  ;;  %v941_v8 = vadd.bf16 %v891_v58, %v2363_v62  ;;  %v1086_v9 = vadd.bf16 %v1036_v59, %v2361_v61  ;;  %v1052_v10 = vpack.i.b16 %v1013_v60, %v1013_v60 }
  0x31   : > { %v1802_v11 = vpack.i.b16 %v980_v56, %v980_v56  ;;  %v942_v12 = vadd.bf16 %v898_v63, %v2363_v62  ;;  %v1087_v14 = vadd.bf16 %v1043_v0, %v2361_v61  ;;  %v943_v16 = vadd.bf16 %v905_v1, %v2363_v62 }
  0x32   : > { %v1050_v17 = vrot.slane %v1045_v2, %v2341_v33  ;;  %v850_v18 = vpack.i.b16 %v842_v3, %v842_v3  ;;  %v995_v19 = vpack.i.b16 %v987_v4, %v987_v4  ;;  %v944_v20 = vadd.bf16 %v912_v5, %v2363_v62 }
  0x33   : > { %v872_v21 = vrot.slane %v1797_v6, %v2341_v33  ;;  %v844_v22 = vunpack.i.h.s16 %v836_v7  ;;  %v981_v23 = vcombine.high %v979_v34, %v979_v34  ;;  %v2153_v24 = vmov 0  }
  0x34   : > { %v949_v25 = vmax.bf16 %v2153_v24, %v941_v8  ;;  %v1094_v26 = vmax.bf16 %v2153_v24, %v1086_v9  ;;  %v1057_v27 = vrot.slane %v1052_v10, %v2341_v33  ;;  %v1017_v28 = vrot.slane %v1802_v11, %v2341_v33 }
  0x35   : > { %v950_v29 = vmax.bf16 %v2153_v24, %v942_v12  ;;  %v1095_v30 = vmax.bf16 %v2153_v24, %v1087_v14  ;;  %v1798_v31 = vpack.i.b16 %v836_v7, %v836_v7  ;;  %v1088_v34 = vadd.bf16 %v1050_v17, %v2361_v61 }
  0x36   : > { %v876_v35 = vrot.slane %v850_v18, %v2341_v33  ;;  %v1021_v36 = vrot.slane %v995_v19, %v2341_v33  ;;  %v2392_v37 = vmax.bf16 %v2153_v24, %v943_v16  ;;  %v914_v38 = vpack.i.b16 %v872_v21, %v872_v21 }
  0x37   : > { %v852_v39 = vpack.i.b16 %v844_v22, %v844_v22  ;;  %v989_v40 = vunpack.i.h.s16 %v981_v23  ;;  %v1102_v42 = vadd.bf16 %v1094_v26, %v949_v25  ;;  %v2395_v43 = vmax.bf16 %v2153_v24, %v944_v20  ;;  %v2031_v22 = vld [vmem:[%s2645_s12 + $0x8] sm:$0xff]  }
  0x38   : > { %v1089_v44 = vadd.bf16 %v1057_v27, %v2361_v61  ;;  %v1059_v45 = vpack.i.b16 %v1017_v28, %v1017_v28  ;;  %v1103_v48 = vadd.bf16 %v1095_v30, %v950_v29  ;;  %v880_v49 = vrot.slane %v1798_v31, %v2341_v33  ;;  %v2027_v27 = vld [vmem:[%s2641_s8 + $0x8] sm:$0xff]   ;;  %1921 = vmatpush3.bf16.msra.mxu0 %v2031_v22 }
  0x39   : > { %v1803_v50 = vpack.i.b16 %v981_v23, %v981_v23  ;;  %v2402_v53 = vmax.bf16 %v2153_v24, %v1088_v34  ;;  %v921_v54 = vpack.i.b16 %v876_v35, %v876_v35  ;;  %v1066_v55 = vpack.i.b16 %v1021_v36, %v1021_v36  ;;  %1922 = vmatprep.subr.bf16.mxu0 %v2151_v15 }
  0x3a   : > { %v919_v58 = vrot.slane %v914_v38, %v2341_v33  ;;  %v884_v59 = vrot.slane %v852_v39, %v2341_v33  ;;  %v997_v60 = vpack.i.b16 %v989_v40, %v989_v40  ;;  %v2409_v1 = vmax.bf16 %v2153_v24, %v1089_v44 }
  0x3b   : > { %v1064_v2 = vrot.slane %v1059_v45, %v2341_v33  ;;  %v928_v5 = vpack.i.b16 %v880_v49, %v880_v49  ;;  %v1025_v6 = vrot.slane %v1803_v50, %v2341_v33  ;;  %v2413_v8 = vcombine.low %v1102_v42, %v1103_v48  ;;  %v2028_v50 = vld [vmem:[%s2641_s8 + $0x10] sm:$0xff]  }
  0x3c   : > { %v926_v9 = vrot.slane %v921_v54, %v2341_v33  ;;  %v1071_v10 = vrot.slane %v1066_v55, %v2341_v33  ;;  %v945_v12 = vadd.bf16 %v919_v58, %v2363_v62  ;;  %v935_v14 = vpack.i.b16 %v884_v59, %v884_v59  ;;  %v2033_v55 = vld [vmem:[%s2645_s12 + $0x18] sm:$0xff]  }
  0x3d   : > { %v1029_v16 = vrot.slane %v997_v60, %v2341_v33  ;;  %v1090_v21 = vadd.bf16 %v1064_v2, %v2361_v61  ;;  %v2430_v28 = vrot.slane %v928_v5, %v2341_v33  ;;  %v1073_v29 = vpack.i.b16 %v1025_v6, %v1025_v6 }
  0x3e   : > { %v946_v35 = vadd.bf16 %v926_v9, %v2363_v62  ;;  %v1091_v36 = vadd.bf16 %v1071_v10, %v2361_v61  ;;  %v1104_v5 = vadd.bf16 %v2402_v53, %v2392_v37  ;;  %v1105_v6 = vadd.bf16 %v2409_v1, %v2395_v43 }
  0x3f   : > { %v1098_v54 = vmax.bf16 %v2153_v24, %v1090_v21  ;;  %v1078_v58 = vrot.slane %v1073_v29, %v2341_v33  ;;  %v784_v21 = vld [vmem:[#allocation2] sm:$0xff]  ;;  %v2036_v29 = vld [vmem:[%s2644_s11 + $0x10] sm:$0xff]  }
  0x40   : > { %v1099_v2 = vmax.bf16 %v2153_v24, %v1091_v36 }
  0xf7   : > { %v1880_v41 = vpop.f32.mrb[0].mxu0 }
  0xf8   : > { %v748_v46 = vadd.f32 %v1880_v41, %v2386_v32  ;;  %v739_v47 = vpop.f32.mrb[1].mxu0  ;;  %v1080_v41 = vpack.i.b16 %v1029_v16, %v1029_v16 }
  0xf9   : > { %v740_v51 = vadd.f32 %v2386_v32, %v739_v47  ;;  %v1881_v52 = vpop.f32.mrb[2].mxu0 }
  0xfa   : > { %v751_v56 = vadd.f32 %v1881_v52, %v2386_v32  ;;  %v742_v57 = vpop.f32.mrb[3].mxu0  ;;  %v772_v3 = vmax.f32 %v748_v46, 0.0  ;;  %v2032_v46 = vld [vmem:[%s2645_s12 + $0x10] sm:$0xff]   ;;  %v953_v52 = vmax.bf16 %v2153_v24, %v945_v12  ;;  %v1085_v59 = vrot.slane %v1080_v41, %v2341_v33 }
  0xfb   : > { %v770_v63 = vmax.f32 %v740_v51, 0.0  ;;  %v743_v0 = vadd.f32 %v2386_v32, %v742_v57  ;;  %v940_v51 = vrot.slane %v935_v14, %v2341_v33  ;;  %1923 = vmatpush3.bf16.msra.mxu0 %v2032_v46 }
  0xfc   : > { %v773_v4 = vmax.f32 %v751_v56, 0.0  ;;  %v789_v30 = vsel %vm785_vm4, %v772_v3, 0.0  ;;  %1924 = vmatprep.subr.bf16.mxu0 %v2151_v15  ;;  %v1093_v37 = vadd.bf16 %v1085_v59, %v2361_v61  ;;  %v1106_v43 = vadd.bf16 %v1098_v54, %v953_v52 }
  0xfd   : > { %v771_v7 = vmax.f32 %v743_v0, 0.0  ;;  %v786_v17 = vsel %vm785_vm4, %v770_v63, 0.0  ;;  %v954_v0 = vmax.bf16 %v2153_v24, %v946_v35  ;;  %v948_v9 = vadd.bf16 %v940_v51, %v2363_v62  ;;  %v1824_v35 = vld [vmem:[%s2643_s10] ss:$0 sm:$0xff] }
  0xfe   : > { %v1119_v11 = vpack.c.bf16 %v773_v4, %v772_v3  ;;  %v791_v42 = vsel %vm785_vm4, %v773_v4, 0.0  ;;  %v2029_v4 = vld [vmem:[%s2641_s8 + $0x18] sm:$0xff]  }
  0xff   : > { %v787_v18 = vsel %vm785_vm4, %v771_v7, 0.0  ;;  %v1884_v19 = vpop.f32.mrb[4].mxu0  ;;  %v1118_v20 = vpack.c.bf16 %v771_v7, %v770_v63  ;;  %v947_v7 = vadd.bf16 %v2430_v28, %v2363_v62  ;;  %1925 = vmatpush3.bf16.msra.mxu0 %v2033_v55  ;;  %v1107_v1 = vadd.bf16 %v1099_v2, %v954_v0  ;;  %v2035_v28 = vld [vmem:[%s2644_s11 + $0x8] sm:$0xff]  }
 0x100   : > { %v788_v23 = vadd.f32 %v787_v18, %v786_v17  ;;  %v764_v25 = vadd.f32 %v1884_v19, %v2386_v32  ;;  %v755_v26 = vpop.f32.mrb[5].mxu0  ;;  %1930 = vmatprep.subr.bf16.mxu0 %v2151_v15  ;;  %v1813_v62 = vcombine.low %v1104_v5, %v1105_v6  ;;  %v1101_v17 = vmax.bf16 %v2153_v24, %v1093_v37 }
 0x101   : > { %v756_v31 = vadd.f32 %v2386_v32, %v755_v26  ;;  %v1885_v34 = vpop.f32.mrb[6].mxu0  ;;  %1894 = vmatprep.mubr.msk.bf16.mxu1 %vm782_vm3, %v1118_v20  ;;  %v955_v14 = vmax.bf16 %v2153_v24, %v947_v7  ;;  %v1814_v18 = vcombine.low %v1106_v43, %v1107_v1  ;;  %v2034_v26 = vld [vmem:[%s2644_s11] sm:$0xff]  }
 0x102   : > { %v790_v38 = vadd.f32 %v789_v30, %v788_v23  ;;  %v767_v39 = vadd.f32 %v1885_v34, %v2386_v32  ;;  %v758_v40 = vpop.f32.mrb[7].mxu0  ;;  %1895 = vmatmul.mubr.msk.bf16.vlgmr.msra.gmra.mrb[0].mxu1 %vm782_vm3, %v1119_v11  ;;  %v776_v47 = vmax.f32 %v764_v25, 0.0  ;;  %v1092_v11 = vadd.bf16 %v1078_v58, %v2361_v61  ;;  %v2037_v30 = vld [vmem:[%s2644_s11 + $0x18] sm:$0xff]  }
 0x103   : > { %v774_v44 = vmax.f32 %v756_v31, 0.0  ;;  %v759_v45 = vadd.f32 %v2386_v32, %v758_v40  ;;  %1903 = vmatpush3.bf16.msra.mxu1 %v2320_v13  ;;  %v956_v61 = vmax.bf16 %v2153_v24, %v948_v9  ;;  %v1395_v31 = vld [vmem:[%s618_s17] sm:$0xf] }
 0x104   : > { %v792_v48 = vadd.f32 %v791_v42, %v790_v38  ;;  %v777_v49 = vmax.f32 %v767_v39, 0.0  ;;  %1904 = vmatprep.subr.bf16.mxu1 %v2027_v27  ;;  %v797_v33 = vsel %vm785_vm4, %v776_v47, 0.0  ;;  %v1100_v16 = vmax.bf16 %v2153_v24, %v1092_v11 }
 0x105   : > { %v793_v13 = vsel %vm785_vm4, %v774_v44, 0.0  ;;  %v775_v32 = vmax.f32 %v759_v45, 0.0  ;;  %v1109_v19 = vadd.bf16 %v1101_v17, %v956_v61  ;;  %v1396_v34 = vmax.bf16 %v2153_v24, %v1395_v31 }
 0x106   : > { %v794_v56 = vadd.f32 %v793_v13, %v792_v48  ;;  %v1121_v57 = vpack.c.bf16 %v777_v49, %v776_v47  ;;  %v799_v53 = vsel %vm785_vm4, %v777_v49, 0.0 }
 0x107   : > { %v795_v60 = vsel %vm785_vm4, %v775_v32, 0.0  ;;  %v1120_v63 = vpack.c.bf16 %v775_v32, %v774_v44  ;;  %1905 = vmatpush3.bf16.msra.mxu1 %v2027_v27 }
 0x108   : > { %v796_v3 = vadd.f32 %v795_v60, %v794_v56  ;;  %1906 = vmatprep.subr.bf16.mxu1 %v2028_v50 }
 0x109   : > { %1898 = vmatprep.mubr.msk.bf16.mxu1 %vm782_vm3, %v1120_v63 }
 0x10a   : > { %1899 = vmatmul.mubr.msk.bf16.gmra.mrb[4].mxu1 %vm782_vm3, %v1121_v57  ;;  %v798_v10 = vadd.f32 %v797_v33, %v796_v3 }
 0x10b   : > { %1907 = vmatpush3.bf16.msra.mxu1 %v2028_v50  ;;  %1910 = vmatprep.mubr.msk.bf16.mxu1 %vm782_vm3, %v2413_v8  ;;  %v1108_v8 = vadd.bf16 %v1100_v16, %v955_v14 }
 0x10c   : > { %v800_v12 = vadd.f32 %v799_v53, %v798_v10  ;;  %1908 = vmatprep.subr.bf16.mxu1 %v2029_v4 }
 0x10d   : > { %v1815_v20 = vcombine.low %v1108_v8, %v1109_v19 }
 0x10e   : > { %802 = vrot.lane.b32.xlu0 %v800_v12, %s2651_s6  ;;  %s2523_s6 = scalar_lea.vmem [#allocation3], %s1775_s22 }
 0x10f   : > { %1909 = vmatpush3.bf16.msra.mxu1 %v2029_v4  ;;  %s1580_s29 = sshll.u32 %s2523_s6, 4  ;;  %s2546_s29 = int_to_ptr.vmem [resolvable:$true] %s1580_s29 }
 0x110   : > { %s2038_s22 = scalar_lea.vmem %s2546_s29, 512  ;;  %p2045_p1 = scmp.lt.s32.totalorder %s2546_s29, %s2043_s1 }
 0x111   : > { %p2039_p12 = scmp.ne.s32.totalorder %s2546_s29, %s2038_s22  ;;  %p2046_p2 = scmp.lt.s32.totalorder %s2044_s2, %s2038_s22 }
 0x112   : > { %1911 = vmatmul.mubr.msk.bf16.vlgmr.msra.gmra.mrb[0].mxu1 %vm782_vm3, %v1813_v62 }
 0x113   : > { %1914 = vmatprep.mubr.msk.bf16.mxu1 %vm782_vm3, %v1814_v18  ;;  %p2040_p13 = pnand %p2039_p12, %p2279_p4  ;;  %p2047_p3 = por %p2046_p2, %p2045_p1 }
 0x115   : > { %p2041_p0 = pneg %p2040_p13 }
 0x117   : > { %p2048_p5 = pnand %p2047_p3, %p2041_p0 }
 0x11a   : > { %1915 = vmatmul.mubr.msk.bf16.gmra.mrb[4].mxu1 %vm782_vm3, %v1815_v20 }
 0x180   : > { %v803_v22 = vpop.permute.xlu0 %802 }
 0x181   : > { %v805_v23 = vadd.f32 %v803_v22, %v784_v21 }
 0x183   : > { %807 = vst.msk [vmem:[#allocation2] sm:$0xff] %vm782_vm3, %v805_v23 }
 0x18a   : > { %v1405_v25 = vld [vmem:[#allocation2] sm:$0xff] }
 0x18b   : > { %v1406_v27 = vpack.c.bf16 %v1405_v25, %v1405_v25 }
 0x18d   : > { %1927 = vmatmul.mubr.msk.bf16.vlgmr.msra.gmra.mrb[8].mxu0 %vm782_vm3, %v1406_v27 }
 0x18e   : > { %1931 = vmatpush3.bf16.msra.mxu0 %v2034_v26  ;;  %1938 = vmatprep.mubr.msk.bf16.mxu0 %vm2154_vm5, %v2151_v15 }
 0x18f   : > { %1932 = vmatprep.subr.bf16.mxu0 %v2151_v15 }
 0x192   : > { %1933 = vmatpush3.bf16.msra.mxu0 %v2035_v28 }
 0x193   : > { %1934 = vmatprep.subr.bf16.mxu0 %v2151_v15 }
 0x196   : > { %1935 = vmatpush3.bf16.msra.mxu0 %v2036_v29 }
 0x197   : > { %1936 = vmatprep.subr.bf16.mxu0 %v2151_v15 }
 0x19a   : > { %1937 = vmatpush3.bf16.msra.mxu0 %v2037_v30 }
 0x19d   : > { %1939 = vmatmul.mubr.msk.bf16.vlgmr.msra.gmra.mrb[12].mxu0 %vm782_vm3, %v1396_v34 }
 0x1e5   : > { %v1912_v36 = vpop.f32.mrb[0].mxu1 }
 0x1e6   : > { %v1361_v38 = vadd.f32 %v1912_v36, %v1824_v35  ;;  %v1321_v39 = vpop.f32.mrb[1].mxu1 }
 0x1e7   : > { %v1359_v40 = vadd.f32 %v1824_v35, %v1321_v39  ;;  %v1913_v41 = vpop.f32.mrb[2].mxu1 }
 0x1e8   : > { %v1369_v42 = vmax.f32 %v1361_v38, 0.0  ;;  %v1362_v15 = vadd.f32 %v1913_v41, %v1824_v35  ;;  %v1324_v44 = vpop.f32.mrb[3].mxu1 }
 0x1e9   : > { %v1367_v24 = vmax.f32 %v1359_v40, 0.0  ;;  %v1360_v45 = vadd.f32 %v1824_v35, %v1324_v44 }
 0x1ea   : > { %v1377_v46 = vpack.c.bf16 %v1369_v42, %v1369_v42  ;;  %v1370_v47 = vmax.f32 %v1362_v15, 0.0 }
 0x1eb   : > { %v1375_v48 = vpack.c.bf16 %v1367_v24, %v1367_v24  ;;  %v1368_v49 = vmax.f32 %v1360_v45, 0.0 }
 0x1ec   : > { %1386 = vst.msk [vmem:[%s2523_s6 + $0x8] sm:$0xf] %vm1383_vm6, %v1377_v46  ;;  %v1378_v50 = vpack.c.bf16 %v1370_v47, %v1370_v47 }
 0x1ed   : > { %1384 = vst.msk [vmem:[%s2523_s6] sm:$0xf] %vm1383_vm6, %v1375_v48  ;;  %v1376_v51 = vpack.c.bf16 %v1368_v49, %v1368_v49  ;;  %v1916_v13 = vpop.f32.mrb[4].mxu1 }
 0x1ee   : > { %1387 = vst.msk [vmem:[%s2523_s6 + $0xc] sm:$0xf] %vm1383_vm6, %v1378_v50  ;;  %v1365_v32 = vadd.f32 %v1916_v13, %v1824_v35  ;;  %v1337_v52 = vpop.f32.mrb[5].mxu1 }
 0x1ef   : > { %1385 = vst.msk [vmem:[%s2523_s6 + $0x4] sm:$0xf] %vm1383_vm6, %v1376_v51  ;;  %v1363_v54 = vadd.f32 %v1824_v35, %v1337_v52  ;;  %v1917_v55 = vpop.f32.mrb[6].mxu1 }
 0x1f0   : > { %v1373_v56 = vmax.f32 %v1365_v32, 0.0  ;;  %v1366_v57 = vadd.f32 %v1917_v55, %v1824_v35  ;;  %v1340_v58 = vpop.f32.mrb[7].mxu1 }
 0x1f1   : > { %v1371_v59 = vmax.f32 %v1363_v54, 0.0  ;;  %v1364_v60 = vadd.f32 %v1824_v35, %v1340_v58 }
 0x1f2   : > { %v1381_v63 = vpack.c.bf16 %v1373_v56, %v1373_v56  ;;  %v1374_v0 = vmax.f32 %v1366_v57, 0.0 }
 0x1f3   : > { %v1379_v2 = vpack.c.bf16 %v1371_v59, %v1371_v59  ;;  %v1372_v3 = vmax.f32 %v1364_v60, 0.0 }
 0x1f4   : > { %1390 = vst.msk [vmem:[%s2523_s6 + $0x18] sm:$0xf] %vm1383_vm6, %v1381_v63  ;;  %v1382_v4 = vpack.c.bf16 %v1374_v0, %v1374_v0 }
 0x1f5   : > { %1388 = vst.msk [vmem:[%s2523_s6 + $0x10] sm:$0xf] %vm1383_vm6, %v1379_v2  ;;  %v1380_v5 = vpack.c.bf16 %v1372_v3, %v1372_v3 }
 0x1f6   : > { %1391 = vst.msk [vmem:[%s2523_s6 + $0x1c] sm:$0xf] %vm1383_vm6, %v1382_v4 }
 0x1f7   : > { %1389 = vst.msk [vmem:[%s2523_s6 + $0x14] sm:$0xf] %vm1383_vm6, %v1380_v5 }
 0x1f8   : > { %2051 = shalt.err (!%p2048_p5)
}
 0x1f9   : > { %s2052_s6 = scalar_lea.hbm %s2544_s24, 512  ;;  %s2056_s0 = scalar_lea.hbm %s2647_s14, 1024 }
 0x1fa   : > { %p2053_p6 = scmp.ne.s32.totalorder %s2544_s24, %s2052_s6  ;;  %p2057_p10 = scmp.lt.u32.totalorder %s2544_s24, %s2647_s14 }
 0x1fb   : > { %p2058_p11 = scmp.lt.u32.totalorder %s2056_s0, %s2052_s6  ;;  %p2060_p13 = scmp.lt.u32.totalorder %s2052_s6, %s2544_s24 }
 0x1fc   : > { %p2054_p7 = pnand %p2053_p6, %p2279_p4 }
 0x1fd   : > { %p2059_p12 = por %p2058_p11, %p2057_p10 }
 0x1fe   : > { %p2055_p9 = pneg %p2054_p7 }
 0x1ff   : > { %p2061_p0 = por %p2060_p13, %p2059_p12 }
 0x201   : > { %p2062_p1 = pnand %p2061_p0, %p2055_p9 }
 0x203   : > { %2065 = shalt.err (!%p2062_p1)
}
 0x204   : > { %s2157_s2 = smov 4   ;;  %s2665_s22 = smov 64   ;;  %v1835_v11 = vld [vmem:[%s2646_s13] ss:$0 sm:$0xff] }
 0x205   : > { %1950 = dma.vmem_to_hbm [thread:$0]  (%p2279_p4), %s2546_s29, 512, %s2544_s24, %s1560_s26, %s2665_s22, %s2665_s22, %s2157_s2  }
 0x206   : > { %s1776_s6 = sshll.u32 %s2517_s27, 3  ;;  %s1840_s0 = sshll.u32 %s2140_s21, 7 }
 0x207   : > { %s604_s16 = scalar_lea.vmem [#allocation5], %s1776_s6  ;;  %s2584_s26 = scalar_lea.hbm %s2648_s15, %s1840_s0 }
 0x208   : > { %s1596_s1 = sshll.u32 %s604_s16, 4  ;;  %s1565_s2 = scalar_lea.sflag [#allocation6], %s2517_s27  ;;  %s2586_s1 = int_to_ptr.vmem [resolvable:$true] %s1596_s1 }
 0x209   : > { %s2066_s22 = scalar_lea.vmem %s2586_s1, 128  ;;  %s2158_s21 = smov [#allocation5]  }
 0x20a   : > { %p2067_p2 = scmp.ne.s32.totalorder %s2586_s1, %s2066_s22  ;;  %s2070_s6 = sshll.u32 %s2158_s21, 4  ;;  %s2071_s6 = int_to_ptr.vmem [resolvable:$false] %s2070_s6 }
 0x20b   : > { %s2072_s25 = scalar_lea.vmem %s2071_s6, 256  ;;  %p2073_p6 = scmp.lt.s32.totalorder %s2586_s1, %s2071_s6 }
 0x20c   : > { %p2068_p3 = pnand %p2067_p2, %p2279_p4  ;;  %p2074_p7 = scmp.lt.s32.totalorder %s2072_s25, %s2066_s22 }
 0x20e   : > { %p2069_p5 = pneg %p2068_p3  ;;  %p2075_p9 = por %p2074_p7, %p2073_p6 }
 0x210   : > { %p2076_p10 = pnand %p2075_p9, %p2069_p5 }
 0x260   : > { %v1476_v33 = vpop.f32.mrb[8].mxu0 }
 0x261   : > { %v1928_v6 = vpop.f32.mrb[9].mxu0 }
 0x262   : > { %v1479_v7 = vpop.f32.mrb[10].mxu0 }
 0x263   : > { %v1929_v9 = vpop.f32.mrb[11].mxu0 }
 0x270   : > { %v1543_v10 = vpop.f32.mrb[12].mxu0 }
 0x271   : > { %v1544_v37 = vadd.f32 %v1543_v10, %v1476_v33  ;;  %v1940_v53 = vpop.f32.mrb[13].mxu0 }
 0x272   : > { %v1546_v43 = vpop.f32.mrb[14].mxu0 }
 0x273   : > { %v1556_v1 = vadd.f32 %v1835_v11, %v1544_v37  ;;  %v1941_v12 = vpop.f32.mrb[15].mxu0 }
 0x275   : > { %v1557_v62 = vmax.f32 %v1556_v1, 0.0 }
 0x277   : > { %1558 = vst.msk [vmem:[%s604_s16] sm:$0xff] %vm782_vm3, %v1557_v62 }
 0x278   : > { %2079 = shalt.err (!%p2076_p10)
}
 0x279   : > { %s2080_s27 = scalar_lea.hbm %s2584_s26, 128  ;;  %s2084_s16 = scalar_lea.hbm %s2648_s15, 256 }
 0x27a   : > { %p2081_p11 = scmp.ne.s32.totalorder %s2584_s26, %s2080_s27  ;;  %p2085_p0 = scmp.lt.u32.totalorder %s2584_s26, %s2648_s15 }
 0x27b   : > { %p2086_p1 = scmp.lt.u32.totalorder %s2084_s16, %s2080_s27  ;;  %p2088_p3 = scmp.lt.u32.totalorder %s2080_s27, %s2584_s26 }
 0x27c   : > { %p2082_p12 = pnand %p2081_p11, %p2279_p4 }
 0x27d   : > { %p2087_p2 = por %p2086_p1, %p2085_p0 }
 0x27e   : > { %p2083_p13 = pneg %p2082_p12 }
 0x27f   : > { %p2089_p5 = por %p2088_p3, %p2087_p2 }
 0x281   : > { %p2090_p6 = pnand %p2089_p5, %p2083_p13 }
 0x283   : > { %2093 = shalt.err (!%p2090_p6)
}
 0x284   : > { %1951 = dma.vmem_to_hbm [thread:$0]  (%p2279_p4), %s2586_s1, 128, %s2584_s26, %s1565_s2  }
 0x285 PF: > { %p1961_p7 = scmp.ge.s32.totalorder %s2148_s23, 2  ;;  %s1608_s22 = sand.u32 1, %s2128_s18  }
 0x286   : > { %s1609_s21 = scalar_lea.sflag [#allocation4], %s1608_s22 }
 0x287   : > { %p1955_p9 = pnand %p1961_p7, %p2286_p8 }
 0x289   : > { %2119 = dma.done.wait (!%p1955_p9), %s1609_s21, 512  }
 0x28a   : > { %2121 = vsyncadd (!%p1955_p9), %s1609_s21, 4294966784  ;;  %s1618_s6 = scalar_lea.sflag [#allocation6], %s1608_s22 }
 0x28b   : > { %2123 = dma.done.wait (!%p1955_p9), %s1618_s6, 128  }
 0x28c   : > { %2125 = vsyncadd (!%p1955_p9), %s1618_s6, 4294967168  ;;  %s32_s23 = sadd.s32 1, %s2148_s23   ;;  %s2666_s28 = sld [smem:[#allocation11_spill]] }
 0x28d   : > { %p29_p10 = scmp.ge.s32.totalorder %s32_s23, 4   ;;  %s2667_s21 = sld [smem:[#allocation9_spill]] }
 0x28e   : > { %s2668_s22 = sld [smem:[#allocation10_spill]]  ;;  %s2669_s18 = smov %s2132_s19 }
 0x28f   : > { %s2670_s19 = smov %s2136_s20  ;;  %31 = sbr.rel (!%p29_p10) target bundleno = 11 (0xb), region = 151 }
 0x292   : > { %s2671_s20 = smov %s2666_s28 }
 0x296   :  { %1623 = vsyncpa [#allocation4], 1 }
 0x297   :  { %1625 = vsyncpa [#allocation4 + $0x1], 1 }
 0x298   :  { %1626 = vsyncpa [#allocation6], 1 }
 0x299   :  { %1628 = vsyncpa [#allocation6 + $0x1], 1 }

</bundles_post_ra>
